<compile_context>
chip_gen: v5e
topology: v5e:2x2
jax: 0.10.0
libtpu: 0.0.40
codegen_flags: <defaults>
</compile_context>

<pallas_src>
import functools

import jax
import jax.numpy as jnp
from jax.experimental import pallas as pl
from jax.experimental.pallas import tpu as pltpu


def _round_up(x, m):
    return (x + m - 1) // m * m


def _focal_loss_kernel(x_ref, t_ref, alpha_ref, out_ref, *, gamma, s_total):
    # x_ref:     (1, C, T)  logits tile, native dtype (f32 / bf16 / ...)
    # t_ref:     (1, 1, T)  int32 target class per spatial position
    # alpha_ref: (1, C, 1)  float32 per-class alpha weights
    # out_ref:   (1, 1, T)  float32 per-position focal loss
    x = x_ref[...].astype(jnp.float32)
    t = t_ref[...]
    alpha = alpha_ref[...].astype(jnp.float32)

    _, C, T = x.shape
    cls = jax.lax.broadcasted_iota(jnp.int32, (1, C, T), 1)
    onehot = cls == t                                   # (1, C, T) bool

    # z[c, s] = +x for the target class, -x otherwise
    z = jnp.where(onehot, x, -x)

    # Single EUP exp reused for both logsigmoid(z) and sigmoid(z):
    #   e      = exp(-|z|)
    #   logpt  = min(z, 0) - log1p(e)                  (stable logsigmoid)
    #   pt     = where(z >= 0, 1, e) / (1 + e)         (sigmoid, approx recip)
    e = jnp.exp(-jnp.abs(z))
    logpt = jnp.minimum(z, 0.0) - jnp.log1p(e)
    pt = jnp.where(z >= 0.0, 1.0, e) * pl.reciprocal(1.0 + e, approx=True)

    one_minus_pt = 1.0 - pt
    g = float(gamma)
    if g == 0.0:
        focal = jnp.ones_like(pt)
    elif g.is_integer() and 0.0 < g <= 8.0:
        # integer gamma (common case, e.g. 2.0): unrolled multiplies, no pow
        focal = one_minus_pt
        for _ in range(int(g) - 1):
            focal = focal * one_minus_pt
    else:
        focal = jnp.power(one_minus_pt, g)

    loss = -(focal * logpt)                              # (1, C, T)
    row_loss = jnp.sum(loss, axis=1, keepdims=True)      # (1, 1, T)

    # at[s] = alpha[target[s]] via one-hot select + sublane reduce
    at = jnp.sum(jnp.where(onehot, alpha, 0.0), axis=1, keepdims=True)
    result = row_loss * at                               # (1, 1, T)

    # Mask the (possibly padded) tail block so garbage reads never escape.
    j = pl.program_id(1) * T + jax.lax.broadcasted_iota(jnp.int32, (1, 1, T), 2)
    out_ref[...] = jnp.where(j < s_total, result, 0.0)


def focal_loss(x, target, *, gamma=0.0, alpha=None, reduction=None, tile_t=32768):
    """JAX/Pallas equivalent of FocalLoss(gamma, alpha, reduction)(input, target)."""
    if x.ndim > 2:
        N, C = x.shape[0], x.shape[1]
        S = 1
        for d in x.shape[2:]:
            S *= d
        x3 = x.reshape(N, C, S)                          # free reshape, no transpose
        t3 = target.reshape(N, 1, S).astype(jnp.int32)
    else:
        # 2-D classification input (M, C): single "image" with M positions.
        M, C = x.shape
        N, S = 1, M
        x3 = x.T.reshape(1, C, S)
        t3 = target.reshape(1, 1, S).astype(jnp.int32)

    if alpha is None:
        # multiplying by 1.0 is numerically identical to skipping alpha scaling
        alpha_vec = jnp.ones((1, C, 1), jnp.float32)
    elif isinstance(alpha, (float, int)):
        # PyTorch builds [alpha, 1 - alpha]: binary semantics, requires C == 2
        if C != 2:
            raise ValueError("scalar alpha implies binary [alpha, 1-alpha] weights; C must be 2")
        alpha_vec = jnp.asarray([float(alpha), 1.0 - float(alpha)], jnp.float32).reshape(1, 2, 1)
    else:
        a = jnp.asarray(alpha, jnp.float32).reshape(-1)
        if a.shape[0] < C:
            raise ValueError("alpha must provide a weight for every class")
        alpha_vec = a[:C].reshape(1, C, 1)

    # Block size on the lane (spatial) axis: as big as a modest VMEM budget
    # allows (keeps double-buffered tiles comfortably under the scoped VMEM
    # default on every generation, incl. v7x's 64 MiB), multiple of 128.
    itemsize = jnp.dtype(x3.dtype).itemsize
    s_pad = _round_up(S, 128)
    budget = 4 * 1024 * 1024                             # per-buffer logits budget
    cap = max(128, (budget // max(C * itemsize, 1)) // 128 * 128)
    block_t = max(128, min(_round_up(min(tile_t, s_pad), 128), cap))

    grid = (N, pl.cdiv(S, block_t))
    kernel = functools.partial(_focal_loss_kernel, gamma=float(gamma), s_total=S)

    out = pl.pallas_call(
        kernel,
        out_shape=jax.ShapeDtypeStruct((N, 1, S), jnp.float32),
        grid_spec=pltpu.PrefetchScalarGridSpec(
            num_scalar_prefetch=0,
            grid=grid,
            in_specs=[
                pl.BlockSpec((1, C, block_t), lambda n, s: (n, 0, s)),  # logits
                pl.BlockSpec((1, 1, block_t), lambda n, s: (n, 0, s)),  # targets
                pl.BlockSpec((1, C, 1), lambda n, s: (0, 0, 0)),        # alpha (replicated)
            ],
            out_specs=pl.BlockSpec((1, 1, block_t), lambda n, s: (n, 0, s)),
        ),
        compiler_params=pltpu.CompilerParams(
            dimension_semantics=("parallel", "parallel")),
    )(x3, t3, alpha_vec)

    loss = out.reshape(-1)                               # (N*S,) == (M,)
    if reduction == "mean":
        return jnp.mean(loss)
    elif reduction == "sum":
        return jnp.sum(loss)
    return loss


def _reference(x, target, gamma, alpha):
    """Pure-JAX reference of the PyTorch FocalLoss semantics (no reduction)."""
    N, C = x.shape[0], x.shape[1]
    x2 = x.astype(jnp.float32).reshape(N, C, -1).transpose(0, 2, 1).reshape(-1, C)
    t2 = target.reshape(-1)
    onehot = jax.nn.one_hot(t2, C, dtype=bool)
    z = jnp.where(onehot, x2, -x2)
    logpt = jax.nn.log_sigmoid(z)
    pt = jnp.exp(logpt)
    ref = jnp.sum(-(1.0 - pt) ** gamma * logpt, axis=1)
    if alpha is not None:
        ref = ref * jnp.asarray(alpha, jnp.float32)[t2]
    return ref


if __name__ == "__main__":
    key = jax.random.PRNGKey(0)
    kx, kt, kx2, kt2 = jax.random.split(key, 4)

    # --- main check: f32 NCHW, per-class alpha, gamma = 2 ---------------------
    N, C, H, W = 2, 4, 16, 16
    x = jax.random.normal(kx, (N, C, H, W), dtype=jnp.float32)
    target = jax.random.randint(kt, (N, H, W), 0, C, dtype=jnp.int32)

    gamma = 2.0
    alpha = [0.1, 0.2, 0.3, 0.4]

    loss = focal_loss(x, target, gamma=gamma, alpha=alpha, reduction=None)
    loss = jax.block_until_ready(loss)

    ref = _reference(x, target, gamma, alpha)
    assert loss.shape == (N * H * W,)
    assert jnp.allclose(loss, ref, rtol=1e-3, atol=1e-3), float(jnp.max(jnp.abs(loss - ref)))

    # --- secondary check: bf16 logits, ragged spatial size, mean reduction ----
    Hb, Wb = 5, 7                                        # S = 35, not a multiple of 128
    xb = jax.random.normal(kx2, (N, C, Hb, Wb), dtype=jnp.bfloat16)
    tb = jax.random.randint(kt2, (N, Hb, Wb), 0, C, dtype=jnp.int32)

    loss_b = focal_loss(xb, tb, gamma=gamma, alpha=None, reduction="mean")
    loss_b = jax.block_until_ready(loss_b)
    ref_b = jnp.mean(_reference(xb, tb, gamma, None))
    assert jnp.allclose(loss_b, ref_b, rtol=2e-2, atol=2e-2), float(jnp.abs(loss_b - ref_b))

    print("KERNEL_OK")
</pallas_src>

<mosaic_0001>
module attributes {stable_mosaic.version = 11 : i64} {
  func.func @_focal_loss_kernel(%arg0: i32, %arg1: i32, %arg2: memref<1x4x256xf32, #tpu.memory_space<vmem>>, %arg3: memref<1x1x256xi32, #tpu.memory_space<vmem>>, %arg4: memref<1x4x1xf32, #tpu.memory_space<vmem>>, %arg5: memref<1x1x256xf32, #tpu.memory_space<vmem>>) attributes {dimension_semantics = [#tpu.dimension_semantics<parallel>, #tpu.dimension_semantics<parallel>], iteration_bounds = array<i64: 2, 1>, scalar_prefetch = 0 : i64, scratch_operands = 0 : i64, tpu.core_type = #tpu.core_type<tc>, window_params = [{transform_indices = @transform_0, window_bounds = array<i64: 1, 4, 256>}, {transform_indices = @transform_1, window_bounds = array<i64: 1, 1, 256>}, {pipeline_mode = #tpu.pipeline_mode<synchronous>, transform_indices = @transform_2, window_bounds = array<i64: 1, 4, 1>}, {transform_indices = @transform_3, window_bounds = array<i64: 1, 1, 256>}]} {
    %c0 = arith.constant 0 : index
    %c0_0 = arith.constant 0 : index
    %c0_1 = arith.constant 0 : index
    %0 = vector.load %arg2[%c0, %c0_0, %c0_1] : memref<1x4x256xf32, #tpu.memory_space<vmem>>, vector<1x4x256xf32>
    %c0_2 = arith.constant 0 : index
    %c0_3 = arith.constant 0 : index
    %c0_4 = arith.constant 0 : index
    %1 = vector.load %arg3[%c0_2, %c0_3, %c0_4] : memref<1x1x256xi32, #tpu.memory_space<vmem>>, vector<1x1x256xi32>
    %c0_5 = arith.constant 0 : index
    %c0_6 = arith.constant 0 : index
    %c0_7 = arith.constant 0 : index
    %2 = vector.load %arg4[%c0_5, %c0_6, %c0_7] : memref<1x4x1xf32, #tpu.memory_space<vmem>>, vector<1x4x1xf32>
    %3 = tpu.iota {dimensions = array<i32: 1>} : vector<1x4x256xi32>
    %4 = vector.broadcast %1 : vector<1x1x256xi32> to vector<1x4x256xi32>
    %5 = arith.cmpi eq, %3, %4 : vector<1x4x256xi32>
    %cst = arith.constant 0.000000e+00 : f32
    %6 = vector.broadcast %cst : f32 to vector<1x4x256xf32>
    %7 = arith.subf %6, %0 : vector<1x4x256xf32>
    %8 = arith.select %5, %0, %7 : vector<1x4x256xi1>, vector<1x4x256xf32>
    %9 = math.absf %8 : vector<1x4x256xf32>
    %cst_8 = arith.constant 0.000000e+00 : f32
    %10 = vector.broadcast %cst_8 : f32 to vector<1x4x256xf32>
    %11 = arith.subf %10, %9 : vector<1x4x256xf32>
    %12 = math.exp %11 : vector<1x4x256xf32>
    %cst_9 = arith.constant 0.000000e+00 : f32
    %13 = vector.broadcast %cst_9 : f32 to vector<1x4x256xf32>
    %14 = arith.minimumf %8, %13 : vector<1x4x256xf32>
    %15 = math.log1p %12 : vector<1x4x256xf32>
    %16 = arith.subf %14, %15 : vector<1x4x256xf32>
    %cst_10 = arith.constant 0.000000e+00 : f32
    %17 = vector.broadcast %cst_10 : f32 to vector<1x4x256xf32>
    %18 = arith.cmpf oge, %8, %17 : vector<1x4x256xf32>
    %cst_11 = arith.constant 1.000000e+00 : f32
    %19 = vector.broadcast %cst_11 : f32 to vector<1x4x256xf32>
    %20 = arith.select %18, %19, %12 : vector<1x4x256xi1>, vector<1x4x256xf32>
    %cst_12 = arith.constant 1.000000e+00 : f32
    %21 = vector.broadcast %cst_12 : f32 to vector<1x4x256xf32>
    %22 = arith.addf %21, %12 : vector<1x4x256xf32>
    %23 = tpu.reciprocal %22 {approx = true} : vector<1x4x256xf32> -> vector<1x4x256xf32>
    %24 = arith.mulf %20, %23 : vector<1x4x256xf32>
    %cst_13 = arith.constant 1.000000e+00 : f32
    %25 = vector.broadcast %cst_13 : f32 to vector<1x4x256xf32>
    %26 = arith.subf %25, %24 : vector<1x4x256xf32>
    %27 = arith.mulf %26, %26 : vector<1x4x256xf32>
    %28 = arith.mulf %27, %16 : vector<1x4x256xf32>
    %cst_14 = arith.constant 0.000000e+00 : f32
    %29 = vector.broadcast %cst_14 : f32 to vector<1x4x256xf32>
    %30 = arith.subf %29, %28 : vector<1x4x256xf32>
    %cst_15 = arith.constant dense<0.000000e+00> : vector<1x256xf32>
    %31 = vector.multi_reduction <add>, %30, %cst_15 [1] : vector<1x4x256xf32> to vector<1x256xf32>
    %32 = vector.shape_cast %31 : vector<1x256xf32> to vector<1x1x256xf32>
    %cst_16 = arith.constant 0.000000e+00 : f32
    %33 = vector.shape_cast %2 : vector<1x4x1xf32> to vector<1x4x1xf32>
    %34 = vector.broadcast %33 : vector<1x4x1xf32> to vector<1x4x256xf32>
    %35 = vector.broadcast %cst_16 : f32 to vector<1x4x256xf32>
    %36 = arith.select %5, %34, %35 : vector<1x4x256xi1>, vector<1x4x256xf32>
    %cst_17 = arith.constant dense<0.000000e+00> : vector<1x256xf32>
    %37 = vector.multi_reduction <add>, %36, %cst_17 [1] : vector<1x4x256xf32> to vector<1x256xf32>
    %38 = vector.shape_cast %37 : vector<1x256xf32> to vector<1x1x256xf32>
    %39 = arith.mulf %32, %38 : vector<1x1x256xf32>
    %c256_i32 = arith.constant 256 : i32
    %40 = arith.muli %arg1, %c256_i32 : i32
    %41 = tpu.iota {dimensions = array<i32: 2>} : vector<1x1x256xi32>
    %42 = vector.broadcast %40 : i32 to vector<1x1x256xi32>
    %43 = arith.addi %42, %41 : vector<1x1x256xi32>
    %c256_i32_18 = arith.constant 256 : i32
    %44 = vector.broadcast %c256_i32_18 : i32 to vector<1x1x256xi32>
    %45 = arith.cmpi slt, %43, %44 : vector<1x1x256xi32>
    %cst_19 = arith.constant 0.000000e+00 : f32
    %46 = vector.broadcast %cst_19 : f32 to vector<1x1x256xf32>
    %47 = arith.select %45, %39, %46 : vector<1x1x256xi1>, vector<1x1x256xf32>
    %c0_20 = arith.constant 0 : index
    %c0_21 = arith.constant 0 : index
    %c0_22 = arith.constant 0 : index
    %48 = vector.load %arg5[%c0_20, %c0_21, %c0_22] : memref<1x1x256xf32, #tpu.memory_space<vmem>>, vector<1x1x256xf32>
    tpu.vector_store %arg5[%c0_20, %c0_21, %c0_22], %47 {strides = array<i32>} : memref<1x1x256xf32, #tpu.memory_space<vmem>>, vector<1x1x256xf32>,
    return
  }
  func.func @transform_0(%arg0: i32, %arg1: i32) -> (i32, i32, i32) {
    %c0_i32 = arith.constant 0 : i32
    %c0_i32_0 = arith.constant 0 : i32
    return %arg0, %c0_i32, %arg1 : i32, i32, i32
  }
  func.func @transform_1(%arg0: i32, %arg1: i32) -> (i32, i32, i32) {
    %c0_i32 = arith.constant 0 : i32
    %c0_i32_0 = arith.constant 0 : i32
    return %arg0, %c0_i32, %arg1 : i32, i32, i32
  }
  func.func @transform_2(%arg0: i32, %arg1: i32) -> (i32, i32, i32) {
    %c0_i32 = arith.constant 0 : i32
    %c0_i32_0 = arith.constant 0 : i32
    %c0_i32_1 = arith.constant 0 : i32
    %c0_i32_2 = arith.constant 0 : i32
    return %c0_i32, %c0_i32_0, %c0_i32_1 : i32, i32, i32
  }
  func.func @transform_3(%arg0: i32, %arg1: i32) -> (i32, i32, i32) {
    %c0_i32 = arith.constant 0 : i32
    %c0_i32_0 = arith.constant 0 : i32
    return %arg0, %c0_i32, %arg1 : i32, i32, i32
  }
}

</mosaic_0001>

<bundles_post_ra>
// kernel: tpu_custom_call.1
= control target key start
LH: loop header
LB: loop body
LE: loop exit
PB: predicated region body
PF: predicated region fallthrough
CT: control target
= control target key end

     0   :  { %8 = vsyncpa [#allocation3], 0  ;;  %s864_s0 = inlined_call_operand.hbm [shape: f32[2,4,256], index: 0, kind: input, shape index: {}]   ;;  %s865_s1 = inlined_call_operand.vmem [shape: s32[2,1,256], index: 1, kind: input, shape index: {}]   ;;  %s866_s2 = inlined_call_operand.vmem [shape: f32[1,4,1], index: 2, kind: input, shape index: {}]   ;;  %s867_s3 = inlined_call_operand.hbm [shape: f32[2,1,256], index: 3, kind: output, shape index: {}]  }
   0x1   :  { %10 = vsyncpa [#allocation3 + $0x1], 0 }
   0x2   :  { %11 = vsyncpa [#allocation4], 0 }
   0x3   :  { %13 = vsyncpa [#allocation4 + $0x1], 0  ;;  %s717_s12 = smov 0   ;;  %s719_s13 = smov 0  }
   0x4   :  { %s721_s14 = smov 0   ;;  %s723_s15 = smov 0  }
   0x5   :  { %s725_s16 = smov 0   ;;  %s727_s17 = smov 0  }
   0x6 LB: > { %s490_s18 = sadd.s32 4294967295, %s694_s17   ;;  %s491_s19 = sadd.s32 4294967294, %s694_s17   ;;  %s694_s17 = sphi %s727_s17, %s19_s17   ;;  %s690_s16 = sphi %s725_s16, %s880_s16   ;;  %s686_s15 = sphi %s723_s15, %s879_s15   ;;  %s682_s14 = sphi %s721_s14, %s878_s14   ;;  %s678_s13 = sphi %s719_s13, %s877_s13   ;;  %s674_s12 = sphi %s717_s12, %s876_s12  }
   0x7   : > { %s31_s20 = sadd.s32 1, %s690_s16  ;;  %s40_s21 = sadd.s32 1, %s682_s14 }
   0x8   : > { %p33_p0 = scmp.ge.s32.totalorder %s31_s20, 2  ;;  %p47_p1 = scmp.ne.s32.totalorder %s682_s14, %s678_s13 }
   0x9   : > { %p48_p2 = scmp.eq.s32.totalorder %s694_s17, 0  ;;  %p53_p3 = scmp.ne.s32.totalorder %s678_s13, %s674_s12 }
   0xa   : > { %s882_s20 = smov (%p33_p0, %s31_s20), 0  ;;  %p54_p5 = scmp.eq.s32.totalorder %s490_s18, 0 }
   0xb   : > { %p758_p4 = por %p48_p2, %p47_p1  ;;  %s35_s23 = ssub.s32 %s690_s16, %s882_s20 }
   0xc   : > { %p128_p6 = scmp.eq.s32.totalorder %s490_s18, 1  ;;  %p38_p7 = scmp.eq.s32.totalorder %s35_s23, 0 }
   0xd   : > { %p764_p8 = por %p54_p5, %p53_p3  ;;  %p134_p10 = scmp.eq.s32.totalorder %s491_s19, 1 }
   0xe   : > { %p768_p9 = por %p128_p6, %p47_p1  ;;  %p493_p12 = scmp.ge.s32.totalorder %s694_s17, 2 }
   0xf   : > { %s773_s26 = scalar_select %p38_p7, %s682_s14, %s40_s21  }
  0x10   : > { %p775_p11 = por %p134_p10, %p53_p3  ;;  %p518_p13 = scmp.lt.s32.totalorder %s694_s17, 2 }
  0x11   : > { %s157_s28 = sand.u32 1, %s682_s14   ;;  %s505_s30 = sshll.u32 %s690_s16, 3 }
  0x12   : > { %s494_s29 = sshll.u32 %s157_s28, 3  ;;  %s168_s6 = scalar_lea.hbm %s864_s0, %s505_s30 }
  0x13   : > { %s161_s7 = scalar_lea.vmem [#allocation2], %s494_s29  ;;  %s170_s9 = sshll.u32 %s168_s6, 4  ;;  %s171_s9 = int_to_ptr.hbm [resolvable:$true] %s170_s9 }
  0x14   : > { %s172_s8 = sshll.u32 %s161_s7, 4  ;;  %p511_p0 = pnand %p518_p13, %p758_p4  ;;  %s173_s8 = int_to_ptr.vmem [resolvable:$true] %s172_s8 }
  0x15   : > { %p497_p1 = scmp.ge.s32.totalorder %s694_s17, 1  ;;  %p189_p2 = scmp.lt.s32.totalorder %s694_s17, 3 }
  0x16   : > { %s158_s10 = scalar_lea.sflag [#allocation3], %s157_s28 }
  0x17   : > { %513 = dma.hbm_to_vmem [thread:$0]  (!%p511_p0), %s171_s9, 128, %s173_s8, %s158_s10  }
  0x18   : > { %p190_p3 = pnand %p497_p1, %p189_p2 }
  0x19   : > { %s791_s11 = sand.u32 (!%p190_p3), 1, %s678_s13  }
  0x1a   : > { %193 = sbr.rel (%p190_p3) target bundleno = 171 (0xab), region = 32  ;;  %s498_s18 = sshll.u32 (!%p190_p3), %s791_s11, 3 }
  0x1b   : > { %s196_s19 = scalar_lea.sflag (!%p190_p3), [#allocation3], %s791_s11  ;;  %s199_s21 = scalar_lea.vmem (!%p190_p3), [#allocation2], %s498_s18 }
  0x1f   : > { %665 = dma.done.wait (%p764_p8), %s196_s19, 128  }
  0x20   : > { %667 = vsyncadd (%p764_p8), %s196_s19, 4294967168  ;;  %v696_v0 = vmov 0   ;;  %v244_v1 = vld [vmem:[%s866_s2] sm:$0xf]  ;;  %p233_p4 = scmp.lt.s32.totalorder %s686_s15, 1  ;;  %v242_v2 = vld [vmem:[%s199_s21] sm:$0xff]  ;;  %v245_v4 = vlaneseq }
  0x21   : > { %569 = vset.pattern.permute.xlu0 %v696_v0  ;;  %253 = vst [vmem:[#allocation1] ss:$2 sm:$0xff] %v242_v2  ;;  %v251_v3 = vsub.f32 0.0, %v242_v2  ;;  %vm314_vm6 = vcmask 1043456   ;;  %s499_s5 = sshll.u32 %s791_s11, 1  ;;  %s502_s6 = sshll.u32 %s686_s15, 1 }
  0x22   : > { %331 = vperm.xlu0 %569, %v244_v1   ;;  %s234_s28 = scalar_select %p233_p4, %s686_s15, 1  ;;  %v246_v7 = vshrl.u32 %v245_v4, 7  ;;  %vm366_vm7 = vcmask 1040384   ;;  %vm371_vm8 = vcmp.lt.s32.totalorder %v245_v4, 256 }
  0x23   : > { %s387_s9 = scalar_lea.hbm %s867_s3, %s502_s6  ;;  %s230_s10 = scalar_lea.vmem [#allocation5], %s499_s5 }
  0x24   : > { %s500_s29 = sshll.u32 %s234_s28, 1  ;;  %s389_s18 = sshll.u32 %s230_s10, 4  ;;  %s390_s18 = int_to_ptr.vmem [resolvable:$true] %s389_s18 }
  0x25   : > { %s239_s4 = scalar_lea.vmem %s865_s1, %s500_s29  ;;  %s391_s19 = sshll.u32 %s387_s9, 4  ;;  %s392_s19 = int_to_ptr.hbm [resolvable:$true] %s391_s19 }
  0x26   : > { %v243_v8 = vld [vmem:[%s239_s4] sm:$0x3]  ;;  %s375_s15 = scalar_lea.sflag [#allocation4], %s791_s11  ;;  %s626_s21 = sshra.s32 %s392_s19, 4  ;;  %s627_s21 = int_to_ptr.hbm [resolvable:$true] %s626_s21 }
  0x27   : > { %v247_v9 = vperm.slane %v243_v8, 0  ;;  %v248_v10 = vperm.slane %v243_v8, 1  ;;  %s628_s22 = scalar_lea.hbm %s627_s21, 2  ;;  %s632_s29 = scalar_lea.hbm %s867_s3, 4 }
  0x28   : > { %v254_v5 = vld.sshfl [vmem:[#allocation1] sm:$0xff pattern:$0x75316420]  ;;  %v255_v6 = vld.sshfl [vmem:[#allocation1 + $0x8] sm:$0xff pattern:$0x75316420]  ;;  %p629_p5 = scmp.ne.s32.totalorder %s627_s21, %s628_s22  ;;  %p633_p8 = scmp.lt.s32.totalorder %s627_s21, %s867_s3 }
  0x29   : > { %259 = vst [vmem:[#allocation1] ss:$2 sm:$0xff] %v251_v3  ;;  %vm808_vm0 = vcmp.eq.s32.totalorder %v246_v7, %v247_v9  ;;  %vm812_vm1 = vcmp.eq.s32.totalorder %v246_v7, %v248_v10  ;;  %p634_p10 = scmp.lt.s32.totalorder %s632_s29, %s628_s22 }
  0x2a   : > { %p630_p6 = pnand %p629_p5, %p768_p9 }
  0x2b   : > { %p635_p13 = por %p634_p10, %p633_p8 }
  0x2c   : > { %p631_p7 = pneg %p630_p6 }
  0x2e   : > { %p636_p0 = pnand %p635_p13, %p631_p7 }
  0x30   : > { %v260_v13 = vld.sshfl [vmem:[#allocation1] sm:$0xff pattern:$0x75316420]  ;;  %v261_v14 = vld.sshfl [vmem:[#allocation1 + $0x8] sm:$0xff pattern:$0x75316420] }
  0x31   : > { %v264_v15 = vsel %vm808_vm0, %v254_v5, %v260_v13  ;;  %v265_v16 = vsel %vm812_vm1, %v255_v6, %v261_v14 }
  0x32   : > { %v266_v17 = vand.u32 2147483647, %v264_v15  ;;  %v267_v18 = vand.u32 2147483647, %v265_v16  ;;  %vm297_vm2 = vcmp.ge.f32.partialorder %v265_v16, 0.0  ;;  %vm296_vm3 = vcmp.ge.f32.partialorder %v264_v15, 0.0 }
  0x33   : > { %v275_v45 = vmin.f32 %v265_v16, 0.0  ;;  %v274_v48 = vmin.f32 %v264_v15, 0.0 }
  0x34   : > { %v268_v19 = vsub.f32 0.0, %v266_v17  ;;  %v269_v20 = vsub.f32 0.0, %v267_v18 }
  0x36   : > { %v272_v21 = vmul.f32 1.442695, %v269_v20  ;;  %v270_v22 = vmul.f32 1.442695, %v268_v19 }
  0x38   : > { %570 = vpow2.f32 %v272_v21 }
  0x39   : > { %572 = vpow2.f32 %v270_v22 }
  0x3e   : > { %v571_v23 = vpop.eup %570 }
  0x3f   : > { %v573_v24 = vpop.eup %572  ;;  %v285_v25 = vadd.f32 1.0, %v571_v23  ;;  %v288_v27 = vmul.f32 -0.5, %v571_v23  ;;  %v299_v31 = vsel %vm297_vm2, 1.0, %v571_v23  ;;  %v291_v33 = vand.u32 2147483647, %v571_v23 }
  0x40   : > { %v276_v26 = vadd.f32 1.0, %v573_v24  ;;  %v279_v28 = vmul.f32 -0.5, %v573_v24  ;;  %v298_v36 = vsel %vm296_vm3, 1.0, %v573_v24  ;;  %v282_v38 = vand.u32 2147483647, %v573_v24 }
  0x41   : > { %574 = vrcp.f32 %v285_v25  ;;  %v289_v30 = vadd.f32 1.0, %v288_v27  ;;  %vm292_vm4 = vcmp.lt.f32.partialorder %v291_v33, 0.0004427343 }
  0x42   : > { %576 = vlog2.f32 %v285_v25  ;;  %v280_v35 = vadd.f32 1.0, %v279_v28  ;;  %vm283_vm5 = vcmp.lt.f32.partialorder %v282_v38, 0.0004427343 }
  0x43   : > { %578 = vrcp.f32 %v276_v26  ;;  %v290_v41 = vmul.f32 %v571_v23, %v289_v30 }
  0x44   : > { %580 = vlog2.f32 %v276_v26  ;;  %v281_v44 = vmul.f32 %v573_v24, %v280_v35 }
  0x47   : > { %v575_v29 = vpop.eup %574 }
  0x48   : > { %v577_v32 = vpop.eup %576  ;;  %v305_v39 = vmul.f32 %v575_v29, %v299_v31 }
  0x49   : > { %v579_v34 = vpop.eup %578  ;;  %v287_v40 = vmul.f32 0.6931472, %v577_v32 }
  0x4a   : > { %v581_v37 = vpop.eup %580  ;;  %v304_v42 = vmul.f32 %v579_v34, %v298_v36  ;;  %v307_v46 = vsub.f32 1.0, %v305_v39 }
  0x4b   : > { %v278_v43 = vmul.f32 0.6931472, %v581_v37  ;;  %v293_v47 = vsel %vm292_vm4, %v290_v41, %v287_v40 }
  0x4c   : > { %v306_v49 = vsub.f32 1.0, %v304_v42  ;;  %v295_v51 = vsub.f32 %v275_v45, %v293_v47  ;;  %v309_v52 = vmul.f32 %v307_v46, %v307_v46 }
  0x4d   : > { %v284_v50 = vsel %vm283_vm5, %v281_v44, %v278_v43 }
  0x4e   : > { %v294_v53 = vsub.f32 %v274_v48, %v284_v50  ;;  %v308_v54 = vmul.f32 %v306_v49, %v306_v49  ;;  %v311_v55 = vmul.f32 %v309_v52, %v295_v51 }
  0x50   : > { %v310_v56 = vmul.f32 %v308_v54, %v294_v53  ;;  %v313_v57 = vsub.f32 0.0, %v311_v55 }
  0x52   : > { %v312_v58 = vsub.f32 0.0, %v310_v56  ;;  %v322_v59 = vsel %vm314_vm6, %v313_v57, 0.0 }
  0x53   : > { %v323_v61 = vrot.slane %v322_v59, 4 }
  0x54   : > { %v315_v60 = vsel %vm314_vm6, %v312_v58, 0.0 }
  0x55   : > { %v316_v62 = vrot.slane %v315_v60, 4  ;;  %v324_v63 = vadd.f32 %v323_v61, %v322_v59 }
  0x57   : > { %v317_v0 = vadd.f32 %v316_v62, %v315_v60  ;;  %v325_v1 = vrot.slane %v324_v63, 2 }
  0x59   : > { %v318_v3 = vrot.slane %v317_v0, 2  ;;  %v326_v9 = vadd.f32 %v325_v1, %v324_v63 }
  0x5b   : > { %v319_v14 = vadd.f32 %v318_v3, %v317_v0  ;;  %v327_v17 = vrot.slane %v326_v9, 1 }
  0x5d   : > { %v320_v20 = vrot.slane %v319_v14, 1  ;;  %v328_v12 = vadd.f32 %v327_v17, %v326_v9 }
  0x5f   : > { %v321_v24 = vadd.f32 %v320_v20, %v319_v14 }
  0x94   : > { %v332_v2 = vpop.permute.xlu0 %331 }
  0x95   : > { %v334_v5 = vsel %vm808_vm0, %v332_v2, 0.0  ;;  %v335_v6 = vsel %vm812_vm1, %v332_v2, 0.0 }
  0x96   : > { %v336_v7 = vsel %vm314_vm6, %v334_v5, 0.0  ;;  %v343_v8 = vsel %vm314_vm6, %v335_v6, 0.0 }
  0x97   : > { %v337_v10 = vrot.slane %v336_v7, 4  ;;  %v344_v13 = vrot.slane %v343_v8, 4 }
  0x99   : > { %v338_v15 = vadd.f32 %v337_v10, %v336_v7  ;;  %v345_v16 = vadd.f32 %v344_v13, %v343_v8 }
  0x9b   : > { %v339_v18 = vrot.slane %v338_v15, 2  ;;  %v346_v19 = vrot.slane %v345_v16, 2 }
  0x9d   : > { %v340_v21 = vadd.f32 %v339_v18, %v338_v15  ;;  %v347_v11 = vadd.f32 %v346_v19, %v345_v16 }
  0x9f   : > { %v341_v22 = vrot.slane %v340_v21, 1  ;;  %v348_v23 = vrot.slane %v347_v11, 1 }
  0xa1   : > { %v342_v25 = vadd.f32 %v341_v22, %v340_v21  ;;  %v349_v26 = vadd.f32 %v348_v23, %v347_v11 }
  0xa3   : > { %v351_v27 = vmul.f32 %v349_v26, %v328_v12  ;;  %v350_v28 = vmul.f32 %v342_v25, %v321_v24 }
  0xa5   : > { %v365_v29 = vrot.slane %v351_v27, 7 }
  0xa7   : > { %v367_v30 = vsel %vm366_vm7, %v350_v28, %v365_v29 }
  0xa8   : > { %373 = vst.msk [vmem:[%s230_s10] sm:$0x3] %vm371_vm8, %v367_v30 }
  0xa9   : > { %639 = shalt.err (!%p636_p0)
}
  0xaa   : > { %508 = dma.vmem_to_hbm [thread:$0]  (%p768_p9), %s390_s18, 32, %s392_s19, %s375_s15  }
  0xab PF: > { %s403_s11 = sand.u32 1, %s674_s12   ;;  %p515_p1 = pnand %p493_p12, %p775_p11 }
  0xac   : > { %s404_s4 = scalar_lea.sflag [#allocation4], %s403_s11 }
  0xad   : > { %p516_p2 = pneg %p515_p1 }
  0xaf   : > { %669 = dma.done.wait (%p516_p2), %s404_s4, 32  }
  0xb0   : > { %671 = vsyncadd (%p516_p2), %s404_s4, 4294967264  ;;  %s19_s17 = sadd.s32 1, %s694_s17   ;;  %s876_s12 = smov %s678_s13 }
  0xb1   : > { %p16_p3 = scmp.ge.s32.totalorder %s19_s17, 4   ;;  %s877_s13 = smov %s682_s14 }
  0xb2   : > { %s878_s14 = smov %s773_s26  ;;  %s879_s15 = smov %s690_s16 }
  0xb3   : > { %s880_s16 = smov %s882_s20  ;;  %18 = sbr.rel (!%p16_p3) target bundleno = 6 (0x6), region = 80 }
  0xb8   :  { %410 = vsyncpa [#allocation3], 1 }
  0xb9   :  { %412 = vsyncpa [#allocation3 + $0x1], 1 }
  0xba   :  { %413 = vsyncpa [#allocation4], 1 }
  0xbb   :  { %415 = vsyncpa [#allocation4 + $0x1], 1 }

</bundles_post_ra>
